<compile_context>
chip_gen: v5e
topology: v5e:2x2
jax: 0.10.0
libtpu: 0.0.40
codegen_flags: <defaults>
</compile_context>

<pallas_src>
import jax
import jax.numpy as jnp
import numpy as np
from jax.experimental import pallas as pl
from jax.experimental.pallas import tpu as pltpu

_LANE = 128
_MiB = 1024 * 1024


def _round_up(x, m):
    return (x + m - 1) // m * m


def _vmem_capacity_bytes():
    """Physical per-core VMEM; conservative fallback if the query fails."""
    try:
        return int(pltpu.get_tpu_info().vmem_capacity_bytes)
    except Exception:
        return 64 * _MiB  # v7x per-TC value: the smallest of current gens


def _pad_dim(dim, cap=512, waste=0.25):
    """Pad `dim` to a multiple of the largest tile (<= cap) whose padding waste
    stays under `waste` of the 128-aligned size (keeps tiles large for sizes
    like 640/1280 without exploding weight traffic)."""
    d128 = _round_up(dim, _LANE)
    t = cap
    while t >= _LANE:
        if t <= d128:
            padded = _round_up(dim, t)
            if padded == d128 or (padded - d128) <= int(d128 * waste):
                return padded
        t //= 2
    return d128


def _plan_tiles(b_pad, kp, np_pad, x_bytes, w_bytes, budget):
    """Pick (tn, tk, x_full_k, w_bufs) so the buffered working set fits
    `budget` bytes of VMEM.  Prefers >=2 feature tiles (v7x megacore), then
    larger tiles, then a full-K resident x block, then 3-deep w buffering."""
    tk_opts = [t for t in (512, 256, 128) if kp % t == 0]
    tn_opts = [t for t in (512, 256, 128) if np_pad % t == 0]
    multi = [t for t in tn_opts if np_pad // t >= 2]
    if multi:
        tn_opts = multi + [t for t in tn_opts if t not in multi]

    def usage(tn, tk, x_full_k, w_bufs):
        nk = kp // tk
        x_cols = kp if x_full_k else tk
        return (2 * b_pad * x_cols * x_bytes            # x (double-buffered)
                + w_bufs * tk * tn * w_bytes            # weight stream
                + 2 * 8 * tn * 4                        # (2, tn) gamma/beta
                + 2 * b_pad * tn * 4                    # f32 output
                + (b_pad * tn * 4 if nk > 1 else 0))    # f32 accumulator

    for tn in tn_opts:
        for tk in tk_opts:
            for x_full_k in (True, False):
                for w_bufs in (3, 2):
                    u = usage(tn, tk, x_full_k, w_bufs)
                    if u <= budget:
                        return tn, tk, x_full_k, w_bufs, u
    # Fallback: smallest tiles (a batch-tiled grid axis with partial sum/sumsq
    # would be needed for truly huge B; not implemented here).
    tn, tk = tn_opts[-1], tk_opts[-1]
    return tn, tk, False, 2, usage(tn, tk, False, 2)


def _make_kernel(nk, tk, x_full_k, inv_b, eps=1e-3):
    def epilogue(y, gb_ref, o_ref):
        # Training-mode BN over the real batch rows; padded rows of y are
        # exactly zero, so sums divided by the real batch size are exact.
        s = jnp.sum(y, axis=0, keepdims=True)
        sq = jnp.sum(y * y, axis=0, keepdims=True)
        mean = s * inv_b
        var = jnp.maximum(sq * inv_b - mean * mean, 0.0)
        scale = jax.lax.rsqrt(var + eps) * gb_ref[0:1, :]
        shift = gb_ref[1:2, :] - mean * scale
        o_ref[...] = jnp.maximum(y * scale + shift, 0.0).astype(o_ref.dtype)

    if nk == 1:
        def kernel(x_ref, w_ref, gb_ref, o_ref):
            y = jnp.dot(x_ref[...], w_ref[...],
                        preferred_element_type=jnp.float32)
            epilogue(y, gb_ref, o_ref)
        return kernel

    def kernel(x_ref, w_ref, gb_ref, o_ref, acc_ref):
        k = pl.program_id(1)
        if x_full_k:
            start = pl.multiple_of(k * tk, tk)
            xs = x_ref[:, pl.ds(start, tk)]
        else:
            xs = x_ref[...]
        part = jnp.dot(xs, w_ref[...], preferred_element_type=jnp.float32)

        @pl.when(k == 0)
        def _():
            acc_ref[...] = part

        @pl.when(jnp.logical_and(k > 0, k < nk - 1))
        def _():
            acc_ref[...] += part

        @pl.when(k == nk - 1)
        def _():
            # Add the final partial product in-register: saves one (B, tn)
            # VMEM store + reload per output tile.
            epilogue(acc_ref[...] + part, gb_ref, o_ref)

    return kernel


def prepare_fc_bn(w, b, gamma, beta, *, matmul_dtype=jnp.bfloat16):
    """Pad/cast the Linear+BN parameters ONCE, outside the per-call hot path.

    w: [Cin, Cout].  b: Linear bias; accepted for nn.Linear parity but dropped
    (training-mode BatchNorm's batch-mean subtraction cancels any per-feature
    constant exactly).  gamma/beta: BN weight/bias, [Cout] or [1, Cout].
    """
    del b
    cin, cout = w.shape
    kp = _pad_dim(cin)
    np_pad = _pad_dim(cout)

    wp = w if (kp, np_pad) == (cin, cout) else jnp.pad(
        w, ((0, kp - cin), (0, np_pad - cout)))
    if wp.dtype != matmul_dtype:
        wp = wp.astype(matmul_dtype)

    gb = jnp.concatenate([jnp.reshape(gamma, (1, cout)),
                          jnp.reshape(beta, (1, cout))], axis=0)
    gb = gb.astype(jnp.float32)
    if np_pad != cout:
        gb = jnp.pad(gb, ((0, 0), (0, np_pad - cout)))

    return dict(w=wp, gb=gb, cin=cin, cout=cout, kp=kp, np=np_pad,
                matmul_dtype=matmul_dtype)


def fc_bn_relu(x, params):
    """x: [B, Cin] -> ReLU(BatchNorm1d(Linear(x))) : [B, Cout] float32."""
    B, cin = x.shape
    assert cin == params["cin"], (cin, params["cin"])
    dt = params["matmul_dtype"]
    kp, np_pad, cout = params["kp"], params["np"], params["cout"]

    x_bytes = np.dtype(dt).itemsize
    sublane = max(8, 32 // x_bytes)              # 8 for f32, 16 for bf16
    b_pad = _round_up(B, sublane)

    xp = x.astype(dt) if x.dtype != dt else x
    if (b_pad, kp) != (B, cin):                  # skip pad when already aligned
        xp = jnp.pad(xp, ((0, b_pad - B), (0, kp - cin)))

    capacity = _vmem_capacity_bytes()
    budget = min(capacity // 2, 96 * _MiB)
    tn, tk, x_full_k, w_bufs, est = _plan_tiles(
        b_pad, kp, np_pad, x_bytes, x_bytes, budget)
    n_j, n_k = np_pad // tn, kp // tk

    kernel = _make_kernel(n_k, tk, x_full_k, 1.0 / B)

    if x_full_k:
        x_spec = pl.BlockSpec((b_pad, kp), lambda j, k: (0, 0))
    else:
        x_spec = pl.BlockSpec((b_pad, tk), lambda j, k: (0, k))

    if w_bufs > 2 and n_j * n_k >= w_bufs:
        w_spec = pl.BlockSpec((tk, tn), lambda j, k: (k, j),
                              pipeline_mode=pl.Buffered(w_bufs))
    else:
        w_spec = pl.BlockSpec((tk, tn), lambda j, k: (k, j))

    scratch = [pltpu.VMEM((b_pad, tn), jnp.float32)] if n_k > 1 else []
    vmem_limit = int(min(capacity * 0.85, max(32 * _MiB, est + 16 * _MiB)))

    out = pl.pallas_call(
        kernel,
        out_shape=jax.ShapeDtypeStruct((b_pad, np_pad), jnp.float32),
        grid_spec=pltpu.PrefetchScalarGridSpec(
            num_scalar_prefetch=0,
            grid=(n_j, n_k),                      # feature tiles, then K
            in_specs=[
                x_spec,
                w_spec,
                pl.BlockSpec((2, tn), lambda j, k: (0, j)),   # [gamma; beta]
            ],
            out_specs=pl.BlockSpec((b_pad, tn), lambda j, k: (0, j)),
            scratch_shapes=scratch,
        ),
        compiler_params=pltpu.CompilerParams(
            dimension_semantics=("parallel", "arbitrary"),
            vmem_limit_bytes=vmem_limit,
        ),
    )(xp, params["w"], params["gb"])

    return out[:B, :cout]


def basic_fc_bn(x, w, b, gamma, beta, *, matmul_dtype=jnp.bfloat16):
    """One-shot convenience wrapper.  Prefer prepare_fc_bn() + fc_bn_relu()
    so the weight pad/cast is not repeated on every call."""
    return fc_bn_relu(x, prepare_fc_bn(w, b, gamma, beta,
                                       matmul_dtype=matmul_dtype))


def _reference(x, w, b, gamma, beta, matmul_dtype=None):
    if matmul_dtype is not None:
        y = jnp.dot(x.astype(matmul_dtype), w.astype(matmul_dtype),
                    preferred_element_type=jnp.float32) + b
    else:
        y = x @ w + b
    mean = jnp.mean(y, axis=0, keepdims=True)
    var = jnp.mean((y - mean) ** 2, axis=0, keepdims=True)
    return jnp.maximum((y - mean) * jax.lax.rsqrt(var + 1e-3) * gamma + beta,
                       0.0)


if __name__ == "__main__":
    # Small shapes consistent with the module: batch=8, in=32, out=32
    B, Cin, Cout = 8, 32, 32

    key = jax.random.PRNGKey(0)
    kx, kw, kb = jax.random.split(key, 3)

    # PyTorch Linear default init: U(-1/sqrt(in), 1/sqrt(in))
    bound = 1.0 / (Cin ** 0.5)
    w = jax.random.uniform(kw, (Cin, Cout), jnp.float32, -bound, bound)
    b = jax.random.uniform(kb, (1, Cout), jnp.float32, -bound, bound)
    gamma = jnp.ones((1, Cout), jnp.float32)   # BN weight default
    beta = jnp.zeros((1, Cout), jnp.float32)   # BN bias default
    x = jax.random.normal(kx, (B, Cin), jnp.float32)

    # f32 MXU operands: bit-tight check against a pure f32 reference.
    params_f32 = prepare_fc_bn(w, b, gamma, beta, matmul_dtype=jnp.float32)
    out_f32 = fc_bn_relu(x, params_f32)
    jax.block_until_ready(out_f32)

    # Default production path: bf16 MXU operands, f32 accumulation.
    params_bf16 = prepare_fc_bn(w, b, gamma, beta)   # matmul_dtype=bfloat16
    out_bf16 = fc_bn_relu(x, params_bf16)
    jax.block_until_ready(out_bf16)

    ref_f32 = _reference(x, w, b, gamma, beta)
    ref_bf16 = _reference(x, w, b, gamma, beta, matmul_dtype=jnp.bfloat16)

    assert out_f32.shape == (B, Cout)
    assert out_bf16.shape == (B, Cout)
    assert jnp.allclose(out_f32, ref_f32, atol=1e-4, rtol=1e-4)
    assert jnp.allclose(out_bf16, ref_bf16, atol=2e-4, rtol=1e-3)

    print("KERNEL_OK")
</pallas_src>

<mosaic_0001>
module attributes {stable_mosaic.version = 11 : i64} {
  func.func @kernel(%arg0: i32, %arg1: i32, %arg2: memref<8x128xf32, #tpu.memory_space<vmem>>, %arg3: memref<128x128xf32, #tpu.memory_space<vmem>>, %arg4: memref<2x128xf32, #tpu.memory_space<vmem>>, %arg5: memref<8x128xf32, #tpu.memory_space<vmem>>) attributes {dimension_semantics = [#tpu.dimension_semantics<parallel>, #tpu.dimension_semantics<arbitrary>], iteration_bounds = array<i64: 1, 1>, scalar_prefetch = 0 : i64, scratch_operands = 0 : i64, tpu.core_type = #tpu.core_type<tc>, window_params = [{pipeline_mode = #tpu.pipeline_mode<synchronous>, transform_indices = @transform_0, window_bounds = array<i64: 8, 128>}, {transform_indices = @transform_1, window_bounds = array<i64: 128, 128>}, {transform_indices = @transform_2, window_bounds = array<i64: 2, 128>}, {transform_indices = @transform_3, window_bounds = array<i64: 8, 128>}]} {
    %c0 = arith.constant 0 : index
    %c0_0 = arith.constant 0 : index
    %0 = vector.load %arg2[%c0, %c0_0] : memref<8x128xf32, #tpu.memory_space<vmem>>, vector<8x128xf32>
    %c0_1 = arith.constant 0 : index
    %c0_2 = arith.constant 0 : index
    %1 = vector.load %arg3[%c0_1, %c0_2] : memref<128x128xf32, #tpu.memory_space<vmem>>, vector<128x128xf32>
    %cst = arith.constant dense<0.000000e+00> : vector<8x128xf32>
    %2 = tpu.matmul %0, %1, %cst {dimension_numbers = #tpu.dot_dimension_numbers<[1], [0], [0], [1], [0, 0, 1, 1], [], []>} : vector<8x128xf32>, vector<128x128xf32>, vector<8x128xf32> -> vector<8x128xf32>
    %cst_3 = arith.constant dense<0.000000e+00> : vector<128xf32>
    %3 = vector.multi_reduction <add>, %2, %cst_3 [0] : vector<8x128xf32> to vector<128xf32>
    %4 = vector.shape_cast %3 : vector<128xf32> to vector<1x128xf32>
    %5 = arith.mulf %2, %2 : vector<8x128xf32>
    %cst_4 = arith.constant dense<0.000000e+00> : vector<128xf32>
    %6 = vector.multi_reduction <add>, %5, %cst_4 [0] : vector<8x128xf32> to vector<128xf32>
    %7 = vector.shape_cast %6 : vector<128xf32> to vector<1x128xf32>
    %cst_5 = arith.constant 1.250000e-01 : f32
    %8 = vector.broadcast %cst_5 : f32 to vector<1x128xf32>
    %9 = arith.mulf %4, %8 : vector<1x128xf32>
    %cst_6 = arith.constant 1.250000e-01 : f32
    %10 = vector.broadcast %cst_6 : f32 to vector<1x128xf32>
    %11 = arith.mulf %7, %10 : vector<1x128xf32>
    %12 = arith.mulf %9, %9 : vector<1x128xf32>
    %13 = arith.subf %11, %12 : vector<1x128xf32>
    %cst_7 = arith.constant 0.000000e+00 : f32
    %14 = vector.broadcast %cst_7 : f32 to vector<1x128xf32>
    %15 = arith.maximumf %13, %14 : vector<1x128xf32>
    %cst_8 = arith.constant 1.000000e-03 : f32
    %16 = vector.broadcast %cst_8 : f32 to vector<1x128xf32>
    %17 = arith.addf %15, %16 : vector<1x128xf32>
    %18 = math.rsqrt %17 : vector<1x128xf32>
    %c0_9 = arith.constant 0 : index
    %c0_10 = arith.constant 0 : index
    %19 = vector.load %arg4[%c0_9, %c0_10] : memref<2x128xf32, #tpu.memory_space<vmem>>, vector<1x128xf32>
    %20 = arith.mulf %18, %19 : vector<1x128xf32>
    %c1 = arith.constant 1 : index
    %c0_11 = arith.constant 0 : index
    %21 = vector.load %arg4[%c1, %c0_11] : memref<2x128xf32, #tpu.memory_space<vmem>>, vector<1x128xf32>
    %22 = arith.mulf %9, %20 : vector<1x128xf32>
    %23 = arith.subf %21, %22 : vector<1x128xf32>
    %24 = vector.broadcast %20 : vector<1x128xf32> to vector<8x128xf32>
    %25 = arith.mulf %2, %24 : vector<8x128xf32>
    %26 = vector.broadcast %23 : vector<1x128xf32> to vector<8x128xf32>
    %27 = arith.addf %25, %26 : vector<8x128xf32>
    %cst_12 = arith.constant 0.000000e+00 : f32
    %28 = vector.broadcast %cst_12 : f32 to vector<8x128xf32>
    %29 = arith.maximumf %27, %28 : vector<8x128xf32>
    %c0_13 = arith.constant 0 : index
    %c0_14 = arith.constant 0 : index
    %30 = vector.load %arg5[%c0_13, %c0_14] : memref<8x128xf32, #tpu.memory_space<vmem>>, vector<8x128xf32>
    tpu.vector_store %arg5[%c0_13, %c0_14], %29 {strides = array<i32>} : memref<8x128xf32, #tpu.memory_space<vmem>>, vector<8x128xf32>,
    return
  }
  func.func @transform_0(%arg0: i32, %arg1: i32) -> (i32, i32) {
    %c0_i32 = arith.constant 0 : i32
    %c0_i32_0 = arith.constant 0 : i32
    %c0_i32_1 = arith.constant 0 : i32
    return %c0_i32, %c0_i32_0 : i32, i32
  }
  func.func @transform_1(%arg0: i32, %arg1: i32) -> (i32, i32) {
    %c0_i32 = arith.constant 0 : i32
    return %arg1, %arg0 : i32, i32
  }
  func.func @transform_2(%arg0: i32, %arg1: i32) -> (i32, i32) {
    %c0_i32 = arith.constant 0 : i32
    %c0_i32_0 = arith.constant 0 : i32
    return %c0_i32, %arg0 : i32, i32
  }
  func.func @transform_3(%arg0: i32, %arg1: i32) -> (i32, i32) {
    %c0_i32 = arith.constant 0 : i32
    %c0_i32_0 = arith.constant 0 : i32
    return %c0_i32, %arg0 : i32, i32
  }
}

</mosaic_0001>

<bundles_post_ra>
// kernel: tpu_custom_call.1
= control target key start
LH: loop header
LB: loop body
LE: loop exit
PB: predicated region body
PF: predicated region fallthrough
CT: control target
= control target key end

     0   :  { %8 = vsyncpa [#allocation3], 0  ;;  %s301_s0 = inlined_call_operand.hbm [shape: f32[8,128], index: 0, kind: input, shape index: {}]   ;;  %s302_s1 = inlined_call_operand.hbm [shape: f32[128,128], index: 1, kind: input, shape index: {}]   ;;  %s303_s2 = inlined_call_operand.hbm [shape: f32[2,128], index: 2, kind: input, shape index: {}]   ;;  %s304_s3 = inlined_call_operand.hbm [shape: f32[8,128], index: 3, kind: output, shape index: {}]  }
   0x1   :  { %9 = vsyncpa [#allocation6], 0  ;;  %s26_s14 = sshll.u32 %s302_s1, 4  ;;  %s27_s14 = int_to_ptr.hbm [resolvable:$true] %s26_s14 }
   0x2   :  { %10 = vsyncpa [#allocation4], 0  ;;  %s263_s15 = smov [#allocation5]   ;;  %s16_s19 = sshll.u32 %s301_s0, 4  ;;  %s17_s19 = int_to_ptr.hbm [resolvable:$true] %s16_s19 }
   0x3   :  { %s28_s16 = sshll.u32 %s263_s15, 4  ;;  %s264_s20 = smov 128   ;;  %s29_s16 = int_to_ptr.vmem [resolvable:$true] %s28_s16 }
   0x4   :  { %s265_s21 = smov 8   ;;  %s266_s22 = smov [#allocation2]  }
   0x5   :  { %34 = dma.hbm_to_vmem [thread:$0]  %s27_s14, 2048, %s29_s16, [#allocation6], %s264_s20, %s264_s20, %s265_s21  }
   0x6   :  { %s18_s23 = sshll.u32 %s266_s22, 4  ;;  %s40_s26 = sshll.u32 %s303_s2, 4  ;;  %s19_s23 = int_to_ptr.vmem [resolvable:$true] %s18_s23  ;;  %s41_s26 = int_to_ptr.hbm [resolvable:$true] %s40_s26 }
   0x7   :  { %21 = dma.hbm_to_vmem [thread:$0]  %s17_s19, 128, %s19_s23, [#allocation3]  }
   0x8   :  { %s267_s1 = smov [#allocation7]  }
   0x9   :  { %s42_s27 = sshll.u32 %s267_s1, 4  ;;  %s43_s27 = int_to_ptr.vmem [resolvable:$true] %s42_s27 }
   0xa   :  { %45 = dma.hbm_to_vmem [thread:$0]  %s41_s26, 32, %s43_s27, [#allocation6]  }
   0xb   :  { %257 = dma.done.wait [#allocation3], 128  }
   0xc   :  { %258 = vsyncadd [#allocation3], 4294967168 }
   0xd   :  { %259 = dma.done.wait [#allocation6], 2080  }
   0xe   :  { %260 = vsyncadd [#allocation6], 4294965216  ;;  %v74_v0 = vld [vmem:[#allocation5 + $0x78] sm:$0xff]  ;;  %v73_v1 = vld [vmem:[#allocation5 + $0x70] sm:$0xff]  ;;  %s268_s0 = smov [#allocation8]   ;;  %s142_s30 = sshll.u32 %s304_s3, 4  ;;  %s143_s30 = int_to_ptr.hbm [resolvable:$true] %s142_s30 }
   0xf   :  { %75 = vmatpush.msra.mxu0 %v74_v0  ;;  %v72_v2 = vld [vmem:[#allocation5 + $0x68] sm:$0xff]  ;;  %v71_v3 = vld [vmem:[#allocation5 + $0x60] sm:$0xff]  ;;  %v70_v4 = vld [vmem:[#allocation5 + $0x58] sm:$0xff]  ;;  %s140_s2 = sshll.u32 %s268_s0, 4  ;;  %s141_s2 = int_to_ptr.vmem [resolvable:$true] %s140_s2 }
  0x10   :  { %v69_v5 = vld [vmem:[#allocation5 + $0x50] sm:$0xff]  ;;  %v68_v6 = vld [vmem:[#allocation5 + $0x48] sm:$0xff]  ;;  %v67_v7 = vld [vmem:[#allocation5 + $0x40] sm:$0xff] }
  0x11   :  { %76 = vmatpush.msra.mxu0 %v73_v1  ;;  %v66_v8 = vld [vmem:[#allocation5 + $0x38] sm:$0xff]  ;;  %v65_v9 = vld [vmem:[#allocation5 + $0x30] sm:$0xff]  ;;  %v64_v10 = vld [vmem:[#allocation5 + $0x28] sm:$0xff] }
  0x12   :  { %v63_v11 = vld [vmem:[#allocation5 + $0x20] sm:$0xff]  ;;  %v62_v12 = vld [vmem:[#allocation5 + $0x18] sm:$0xff]  ;;  %v61_v13 = vld [vmem:[#allocation5 + $0x10] sm:$0xff] }
  0x13   :  { %77 = vmatpush.msra.mxu0 %v72_v2  ;;  %v60_v14 = vld [vmem:[#allocation5 + $0x8] sm:$0xff]  ;;  %v59_v15 = vld [vmem:[#allocation5] sm:$0xff]  ;;  %v58_v16 = vld [vmem:[#allocation2] sm:$0xff] }
  0x14   :  { %v124_v43 = vld [vmem:[#allocation7] sm:$0x1]  ;;  %v126_v46 = vld [vmem:[#allocation7 + $0x1] sm:$0x1] }
  0x15   :  { %78 = vmatpush.msra.mxu0 %v71_v3 }
  0x17   :  { %79 = vmatpush.msra.mxu0 %v70_v4 }
  0x19   :  { %80 = vmatpush.msra.mxu0 %v69_v5 }
  0x1b   :  { %81 = vmatpush.msra.mxu0 %v68_v6 }
  0x1d   :  { %82 = vmatpush.msra.mxu0 %v67_v7 }
  0x1f   :  { %83 = vmatpush.msra.mxu0 %v66_v8 }
  0x21   :  { %84 = vmatpush.msra.mxu0 %v65_v9 }
  0x23   :  { %85 = vmatpush.msra.mxu0 %v64_v10 }
  0x25   :  { %86 = vmatpush.msra.mxu0 %v63_v11 }
  0x27   :  { %87 = vmatpush.msra.mxu0 %v62_v12 }
  0x29   :  { %88 = vmatpush.msra.mxu0 %v61_v13 }
  0x2b   :  { %89 = vmatpush.msra.mxu0 %v60_v14 }
  0x2d   :  { %90 = vmatpush.msra.mxu0 %v59_v15 }
  0x2e   :  { %91 = vmatmul.f32.vlgmr.msra.gmra.mxu0 %v58_v16 }
  0xab   :  { %v92_v17 = vpop.f32.mrf.mxu0 }
  0xac   :  { %v95_v18 = vrot.slane %v92_v17, 4  ;;  %v101_v19 = vmul.f32 %v92_v17, %v92_v17 }
  0xae   :  { %v96_v20 = vadd.f32 %v95_v18, %v92_v17  ;;  %v102_v21 = vrot.slane %v101_v19, 4 }
  0xb0   :  { %v97_v22 = vrot.slane %v96_v20, 2  ;;  %v103_v23 = vadd.f32 %v102_v21, %v101_v19 }
  0xb2   :  { %v98_v24 = vadd.f32 %v97_v22, %v96_v20  ;;  %v104_v25 = vrot.slane %v103_v23, 2 }
  0xb4   :  { %v99_v26 = vrot.slane %v98_v24, 1  ;;  %v105_v27 = vadd.f32 %v104_v25, %v103_v23 }
  0xb6   :  { %v100_v28 = vadd.f32 %v99_v26, %v98_v24  ;;  %v106_v29 = vrot.slane %v105_v27, 1 }
  0xb8   :  { %v107_v30 = vadd.f32 %v106_v29, %v105_v27  ;;  %v108_v31 = vmul.f32 0.125, %v100_v28 }
  0xba   :  { %v109_v32 = vmul.f32 0.125, %v107_v30  ;;  %v110_v33 = vmul.f32 %v108_v31, %v108_v31 }
  0xbc   :  { %v111_v34 = vsub.f32 %v109_v32, %v110_v33 }
  0xbe   :  { %v112_v35 = vmax.f32 %v111_v34, 0.0 }
  0xc0   :  { %v113_v36 = vadd.f32 0.001, %v112_v35 }
  0xc2   :  { %159 = vrsqrt.f32 %v113_v36  ;;  %vm120_vm1 = vweird.f32 %v113_v36 }
  0xc8   :  { %v160_v37 = vpop.eup %159 }
  0xc9   :  { %v115_v38 = vmul.f32 %v160_v37, %v113_v36  ;;  %vm121_vm0 = vweird.f32 %v160_v37 }
  0xca   :  { %vm122_vm2 = vmor %vm120_vm1, %vm121_vm0 }
  0xcb   :  { %v116_v39 = vmul.f32 %v160_v37, %v115_v38 }
  0xcd   :  { %v117_v40 = vmul.f32 0.5, %v116_v39 }
  0xcf   :  { %v118_v41 = vsub.f32 1.5, %v117_v40 }
  0xd1   :  { %v119_v42 = vmul.f32 %v160_v37, %v118_v41 }
  0xd3   :  { %v123_v44 = vsel %vm122_vm2, %v160_v37, %v119_v42 }
  0xd4   :  { %v125_v45 = vmul.f32 %v124_v43, %v123_v44 }
  0xd6   :  { %v127_v47 = vmul.f32 %v125_v45, %v108_v31  ;;  %v129_v48 = vperm.slane %v125_v45, 0 }
  0xd8   :  { %v128_v49 = vsub.f32 %v126_v46, %v127_v47  ;;  %v130_v50 = vmul.f32 %v129_v48, %v92_v17 }
  0xda   :  { %v131_v51 = vperm.slane %v128_v49, 0 }
  0xdc   :  { %v132_v52 = vadd.f32 %v131_v51, %v130_v50 }
  0xde   :  { %v133_v53 = vmax.f32 %v132_v52, 0.0 }
  0xe0   :  { %134 = vst [vmem:[#allocation8] sm:$0xff] %v133_v53 }
  0xe1   :  { %145 = dma.vmem_to_hbm [thread:$0]  %s141_s2, 128, %s143_s30, [#allocation4]  }
  0xe2   :  { %261 = dma.done.wait [#allocation4], 128  }
  0xe3   :  { %262 = vsyncadd [#allocation4], 4294967168 }
  0xe4   :  { %150 = vsyncpa [#allocation3], 1 }
  0xe5   :  { %151 = vsyncpa [#allocation6], 1 }
  0xe6   :  { %152 = vsyncpa [#allocation4], 1 }

</bundles_post_ra>
